<compile_context>
chip_gen: v6e
topology: v6e:2x2x1
jax: 0.10.0
libtpu: 0.0.40
codegen_flags: <defaults>
</compile_context>

<pallas_src>
import jax
import jax.numpy as jnp
from jax.experimental import pallas as pl
from jax.experimental.pallas import tpu as pltpu


# ----------------------------------------------------------------------------
# reset_mask: scaled Bernoulli mask (inverted dropout), kept in float32.
# ----------------------------------------------------------------------------
def rnndrop_reset_mask(key, mask_dim, drop_prob):
    """Equivalent of RNNDrop.reset_mask: bernoulli(1-p) * 1/(1-p), float32."""
    keep_prob = 1.0 - drop_prob
    u = jax.random.uniform(key, mask_dim, dtype=jnp.float32)
    return (u < jnp.float32(keep_prob)).astype(jnp.float32) * jnp.float32(
        1.0 / keep_prob
    )


# ----------------------------------------------------------------------------
# forward kernel: out = mask * x  (mask broadcast over the time axis).
# ----------------------------------------------------------------------------
def _rnndrop_forward_kernel(m_ref, x_ref, o_ref):
    # m_ref: (Bt, 1, H) float32 mask, x_ref/o_ref: (Bt, Tt, H).
    # Multiply in f32 so the 1/(1-p) scale is exact even for bf16 inputs;
    # the VPU cast/multiply hides entirely under the HBM stream.
    o_ref[...] = (m_ref[...] * x_ref[...].astype(jnp.float32)).astype(o_ref.dtype)


def _pick_block_shape(B, T, H, itemsize, target_bytes):
    """Choose (Bt, Tt) so a single x block is ~target_bytes (cap at full dims)."""
    # Sublane granularity for the second-minor dim (8 for f32, 16 for bf16).
    sub = max(1, 32 // (8 * itemsize)) * 8
    row_bytes = T * H * itemsize
    if row_bytes <= target_bytes:
        # One batch row is small: pack several rows per block, keep full T.
        bt = max(1, min(B, target_bytes // max(1, row_bytes)))
        tt = T
    else:
        # One batch row is big: tile the time axis to ~target_bytes.
        bt = 1
        tt = (target_bytes // (H * itemsize)) // sub * sub
        tt = min(T, max(sub, tt))
    return bt, tt


def rnndrop_forward(mask, x, *, target_block_bytes=2 * 1024 * 1024):
    """Equivalent of RNNDrop.forward: mask * input, mask broadcast over time.

    mask: (B, H) float mask (output of rnndrop_reset_mask).
    x:    (B, T, H) activations.
    """
    B, T, H = x.shape
    assert mask.shape == (B, H), (mask.shape, (B, H))
    itemsize = jnp.dtype(x.dtype).itemsize

    bt, tt = _pick_block_shape(B, T, H, itemsize, target_block_bytes)
    grid = (pl.cdiv(B, bt), pl.cdiv(T, tt))

    # Keep the mask in f32; just add the broadcast (time) axis so the block's
    # last two dims (1, H) equal the full array dims (no (8,128) padding).
    mask3 = mask.astype(jnp.float32).reshape(B, 1, H)

    return pl.pallas_call(
        _rnndrop_forward_kernel,
        out_shape=jax.ShapeDtypeStruct((B, T, H), x.dtype),
        grid=grid,
        in_specs=[
            # Mask block: same block index across the (innermost) T-tile axis
            # -> stays resident in VMEM for every time tile of this row block.
            pl.BlockSpec((bt, 1, H), lambda b, t: (b, 0, 0)),
            pl.BlockSpec((bt, tt, H), lambda b, t: (b, t, 0)),
        ],
        out_specs=pl.BlockSpec((bt, tt, H), lambda b, t: (b, t, 0)),
        compiler_params=pltpu.CompilerParams(
            # Batch-row axis sharded across TensorCores (megacore); time axis
            # kept sequential so the mask tile is fetched once per row block.
            dimension_semantics=("parallel", "arbitrary")
        ),
    )(mask3, x)


if __name__ == "__main__":
    B, T, H = 2, 8, 128  # H multiple of 128 keeps stores lane-dense
    drop_prob = 0.3

    key = jax.random.PRNGKey(0)
    kx, km = jax.random.split(key)
    x = jax.random.normal(kx, (B, T, H), dtype=jnp.float32)

    # reset_mask (once per batch), then forward.
    mask = rnndrop_reset_mask(km, (B, H), drop_prob)
    mask = jax.block_until_ready(mask)

    out = rnndrop_forward(mask, x)
    out = jax.block_until_ready(out)

    # Reference check of forward semantics (mask * input, broadcast over T).
    ref = mask[:, None, :] * x
    assert out.shape == (B, T, H)
    assert jnp.allclose(out, ref, atol=1e-6, rtol=1e-6)

    # Sanity: mask values are either 0 or 1/(1-p).
    q = 1.0 / (1.0 - drop_prob)
    assert bool(jnp.all((mask == 0.0) | (jnp.abs(mask - q) < 1e-5)))

    print("KERNEL_OK")
</pallas_src>

<mosaic_0001>
module attributes {stable_mosaic.version = 11 : i64} {
  func.func @_rnndrop_forward_kernel(%arg0: i32, %arg1: i32, %arg2: memref<2x1x128xf32, #tpu.memory_space<vmem>>, %arg3: memref<2x8x128xf32, #tpu.memory_space<vmem>>, %arg4: memref<2x8x128xf32, #tpu.memory_space<vmem>>) attributes {dimension_semantics = [#tpu.dimension_semantics<parallel>, #tpu.dimension_semantics<arbitrary>], iteration_bounds = array<i64: 1, 1>, scalar_prefetch = 0 : i64, scratch_operands = 0 : i64, tpu.core_type = #tpu.core_type<tc>, window_params = [{transform_indices = @transform_0, window_bounds = array<i64: 2, 1, 128>}, {transform_indices = @transform_1, window_bounds = array<i64: 2, 8, 128>}, {transform_indices = @transform_2, window_bounds = array<i64: 2, 8, 128>}]} {
    %c0 = arith.constant 0 : index
    %c0_0 = arith.constant 0 : index
    %c0_1 = arith.constant 0 : index
    %0 = vector.load %arg2[%c0, %c0_0, %c0_1] : memref<2x1x128xf32, #tpu.memory_space<vmem>>, vector<2x1x128xf32>
    %c0_2 = arith.constant 0 : index
    %c0_3 = arith.constant 0 : index
    %c0_4 = arith.constant 0 : index
    %1 = vector.load %arg3[%c0_2, %c0_3, %c0_4] : memref<2x8x128xf32, #tpu.memory_space<vmem>>, vector<2x8x128xf32>
    %2 = vector.broadcast %0 : vector<2x1x128xf32> to vector<2x8x128xf32>
    %3 = arith.mulf %2, %1 : vector<2x8x128xf32>
    %c0_5 = arith.constant 0 : index
    %c0_6 = arith.constant 0 : index
    %c0_7 = arith.constant 0 : index
    %4 = vector.load %arg4[%c0_5, %c0_6, %c0_7] : memref<2x8x128xf32, #tpu.memory_space<vmem>>, vector<2x8x128xf32>
    tpu.vector_store %arg4[%c0_5, %c0_6, %c0_7], %3 {strides = array<i32>} : memref<2x8x128xf32, #tpu.memory_space<vmem>>, vector<2x8x128xf32>,
    return
  }
  func.func @transform_0(%arg0: i32, %arg1: i32) -> (i32, i32, i32) {
    %c0_i32 = arith.constant 0 : i32
    %c0_i32_0 = arith.constant 0 : i32
    %c0_i32_1 = arith.constant 0 : i32
    return %arg0, %c0_i32, %c0_i32_0 : i32, i32, i32
  }
  func.func @transform_1(%arg0: i32, %arg1: i32) -> (i32, i32, i32) {
    %c0_i32 = arith.constant 0 : i32
    %c0_i32_0 = arith.constant 0 : i32
    return %arg0, %arg1, %c0_i32 : i32, i32, i32
  }
  func.func @transform_2(%arg0: i32, %arg1: i32) -> (i32, i32, i32) {
    %c0_i32 = arith.constant 0 : i32
    %c0_i32_0 = arith.constant 0 : i32
    return %arg0, %arg1, %c0_i32 : i32, i32, i32
  }
}

</mosaic_0001>

<bundles_post_ra>
// kernel: tpu_custom_call.1
= control target key start
LH: loop header
LB: loop body
LE: loop exit
PB: predicated region body
PF: predicated region fallthrough
CT: control target
= control target key end

     0   :  { %7 = vsyncpa [#allocation3], 0  ;;  %s184_s0 = inlined_call_operand.hbm [shape: f32[2,1,128], index: 0, kind: input, shape index: {}]   ;;  %s185_s1 = inlined_call_operand.hbm [shape: f32[2,8,128], index: 1, kind: input, shape index: {}]   ;;  %s186_s2 = inlined_call_operand.hbm [shape: f32[2,8,128], index: 2, kind: output, shape index: {}]  }
   0x1   :  { %8 = vsyncpa [#allocation6], 0 }
   0x2   :  { %9 = vsyncpa [#allocation4], 0  ;;  %s153_s9 = smov [#allocation2]  }
   0x3   :  { %s15_s10 = sshll.u32 %s153_s9, 4  ;;  %s16_s10 = int_to_ptr.vmem [resolvable:$true] %s15_s10 }
   0x4   :  { %s95_s11 = scalar_lea.vmem %s16_s10, 32  ;;  %p100_p1 = scmp.lt.s32.totalorder %s16_s10, %s16_s10 }
   0x5   :  { %p96_p0 = scmp.ne.s32.totalorder %s16_s10, %s95_s11  ;;  %p101_p2 = scmp.lt.s32.totalorder %s95_s11, %s95_s11 }
   0x7   :  { %p102_p3 = por %p101_p2, %p100_p1 }
   0x9   :  { %p103_p4 = pnand %p102_p3, %p96_p0 }
   0xb   :  { %106 = shalt.err (!%p103_p4)
}
   0xc   :  { %s154_s12 = smov 16   ;;  %s155_s13 = smov 1  }
   0xd   :  { %21 = dma.hbm_to_vmem [thread:$0]  %s184_s0, 32, %s16_s10, [#allocation3], %s154_s12, %s154_s12, %s155_s13  }
   0xe   :  { %s156_s16 = smov [#allocation5]  }
   0xf   :  { %s27_s17 = sshll.u32 %s156_s16, 4  ;;  %s28_s17 = int_to_ptr.vmem [resolvable:$true] %s27_s17 }
  0x10   :  { %s115_s18 = scalar_lea.vmem %s28_s17, 256  ;;  %p120_p6 = scmp.lt.s32.totalorder %s28_s17, %s28_s17 }
  0x11   :  { %p116_p5 = scmp.ne.s32.totalorder %s28_s17, %s115_s18  ;;  %p121_p7 = scmp.lt.s32.totalorder %s115_s18, %s115_s18 }
  0x13   :  { %p122_p8 = por %p121_p7, %p120_p6 }
  0x15   :  { %p123_p9 = pnand %p122_p8, %p116_p5 }
  0x17   :  { %126 = shalt.err (!%p123_p9)
}
  0x18   :  { %s157_s19 = smov 128   ;;  %s158_s20 = smov 8  }
  0x19   :  { %33 = dma.hbm_to_vmem [thread:$0]  %s185_s1, 256, %s28_s17, [#allocation6], %s157_s19, %s157_s19, %s158_s20  }
  0x1a   :  { %147 = dma.done.wait [#allocation3], 32  }
  0x1b   :  { %148 = vsyncadd [#allocation3], 4294967264 }
  0x1c   :  { %149 = dma.done.wait [#allocation6], 256  }
  0x1d   :  { %150 = vsyncadd [#allocation6], 4294967040  ;;  %s159_s0 = smov [#allocation7]   ;;  %v78_v0 = vld [vmem:[#allocation2] ss:$0 sm:$0xff]  ;;  %v42_v1 = vld [vmem:[#allocation5] sm:$0xff] }
  0x1e   :  { %s65_s23 = sshll.u32 %s159_s0, 4  ;;  %v79_v2 = vld [vmem:[#allocation2 + $0x1] ss:$0 sm:$0xff]  ;;  %v56_v3 = vmul.f32 %v78_v0, %v42_v1  ;;  %v43_v4 = vld [vmem:[#allocation5 + $0x8] sm:$0xff]  ;;  %s66_s23 = int_to_ptr.vmem [resolvable:$true] %s65_s23 }
  0x1f   :  { %v57_v5 = vmul.f32 %v79_v2, %v43_v4  ;;  %s127_s24 = scalar_lea.vmem %s66_s23, 256  ;;  %p132_p11 = scmp.lt.s32.totalorder %s66_s23, %s66_s23 }
  0x20   :  { %58 = vst [vmem:[#allocation7] sm:$0xff] %v56_v3  ;;  %p128_p10 = scmp.ne.s32.totalorder %s66_s23, %s127_s24  ;;  %p133_p12 = scmp.lt.s32.totalorder %s127_s24, %s127_s24 }
  0x21   :  { %59 = vst [vmem:[#allocation7 + $0x8] sm:$0xff] %v57_v5 }
  0x22   :  { %p134_p13 = por %p133_p12, %p132_p11 }
  0x24   :  { %p135_p0 = pnand %p134_p13, %p128_p10 }
  0x26   :  { %138 = shalt.err (!%p135_p0)
}
  0x27   :  { %71 = dma.vmem_to_hbm [thread:$0]  %s66_s23, 256, %s186_s2, [#allocation4], %s157_s19, %s157_s19, %s158_s20  }
  0x28   :  { %151 = dma.done.wait [#allocation4], 256  }
  0x29   :  { %152 = vsyncadd [#allocation4], 4294967040 }
  0x2a   :  { %75 = vsyncpa [#allocation3], 1 }
  0x2b   :  { %76 = vsyncpa [#allocation6], 1 }
  0x2c   :  { %77 = vsyncpa [#allocation4], 1 }

</bundles_post_ra>
